<compile_context>
chip_gen: v5e
topology: v5e:2x2
jax: 0.10.0
libtpu: 0.0.40
codegen_flags: <defaults>
</compile_context>

<pallas_src>
import jax
import jax.numpy as jnp
import numpy as np
from jax.experimental import pallas as pl
from jax.experimental.pallas import tpu as pltpu


def _round_up(x, m):
    return ((x + m - 1) // m) * m


def cbow_kernel(idx_ref, emb_ref, w_ref, b_ref, out_ref, acc_ref):
    """One (batch_tile, vocab_tile) grid step of the CBOW forward.

    idx_ref: VMEM (TB, C) int32  context-word indices for this batch tile
    emb_ref: VMEM (V, D)  f32    embedding table (invariant, single-buffered)
    w_ref:   VMEM (D, TN) f32    transposed Linear weight, vocab tile n
    b_ref:   VMEM (1, TN) f32    bias, vocab tile n
    out_ref: VMEM (TB, TN) f32   logits tile
    acc_ref: VMEM (TB, D)  f32   context-sum carry across the vocab axis
    """
    n = pl.program_id(1)
    TB, C = idx_ref.shape
    V_emb, _ = emb_ref.shape

    # Gather + context sum: only once per batch tile (n == 0), result is
    # carried in acc_ref across all vocab tiles of this batch tile.
    @pl.when(n == 0)
    def _():
        idx = idx_ref[...]                                          # (TB, C)
        vids = jax.lax.broadcasted_iota(jnp.int32, (TB, V_emb), 1)  # lane iota
        counts = jnp.zeros((TB, V_emb), jnp.float32)
        for c in range(C):  # C is tiny (context window), static unroll
            counts = counts + (idx[:, c:c + 1] == vids).astype(jnp.float32)
        # One MXU matmul replaces TB*C dynamic row gathers + VALU adds.
        acc_ref[...] = jnp.dot(counts, emb_ref[...],
                               preferred_element_type=jnp.float32)

    # Batched (TB, D) @ (D, TN) MXU matmul + bias broadcast for this vocab tile.
    logits = jnp.dot(acc_ref[...], w_ref[...],
                     preferred_element_type=jnp.float32) + b_ref[...]
    out_ref[...] = logits.astype(out_ref.dtype)


def word2vec_cbow_forward(context_words, emb_table, w_t, bias, *,
                          tb=128, tn=512):
    """CBOW forward:  logits = (sum_c Emb[idx[:, c]]) @ W^T + b.

    context_words: (B, C) int32
    emb_table:     (V, D) float32   (nn.Embedding weight)
    w_t:           (D, V) float32   (nn.Linear weight, pre-transposed)
    bias:          (V,)   float32
    returns:       (B, V) float32 logits
    """
    B, C = context_words.shape
    V, D = emb_table.shape

    # Batch tile: as large as the (padded) real batch allows, multiple of 8.
    TB = min(tb, _round_up(B, 8))
    B_pad = _round_up(B, TB)
    # Vocab tile: multiple of 128.
    TN = min(tn, _round_up(V, 128))
    V_pad = _round_up(V, TN)

    idx = context_words
    if B_pad != B:
        idx = jnp.concatenate(
            [idx, jnp.zeros((B_pad - B, C), dtype=idx.dtype)], axis=0)
    w_p, b_p = w_t, bias
    if V_pad != V:
        w_p = jnp.pad(w_p, ((0, 0), (0, V_pad - V)))
        b_p = jnp.pad(b_p, ((0, V_pad - V),))
    b2d = b_p.reshape(1, V_pad)

    grid = (B_pad // TB, V_pad // TN)

    grid_spec = pltpu.PrefetchScalarGridSpec(
        num_scalar_prefetch=0,
        grid=grid,
        in_specs=[
            # Context indices for this batch tile (invariant along vocab axis).
            pl.BlockSpec((TB, C), lambda bt, n: (bt, 0)),
            # Whole embedding table: invariant -> single-buffered, one DMA.
            pl.BlockSpec((V, D), lambda bt, n: (0, 0),
                         pipeline_mode=pl.Buffered(1)),
            # Vocab-tiled transposed Linear weight (streams along n).
            pl.BlockSpec((D, TN), lambda bt, n: (0, n)),
            # Vocab-tiled bias.
            pl.BlockSpec((1, TN), lambda bt, n: (0, n)),
        ],
        out_specs=pl.BlockSpec((TB, TN), lambda bt, n: (bt, n)),
        scratch_shapes=[pltpu.VMEM((TB, D), jnp.float32)],
    )

    out = pl.pallas_call(
        cbow_kernel,
        out_shape=jax.ShapeDtypeStruct((B_pad, V_pad), jnp.float32),
        grid_spec=grid_spec,
        compiler_params=pltpu.CompilerParams(
            dimension_semantics=("parallel", "arbitrary"),
            vmem_limit_bytes=48 * 1024 * 1024),
    )(idx, emb_table, w_p, b2d)

    return out[:B, :V]


if __name__ == "__main__":
    # Small, deterministic problem sizes consistent with the module.
    vocab_size = 256
    embedding_dim = 128
    batch = 8
    context_size = 4  # CBOW window of 2 on each side

    key = jax.random.PRNGKey(0)
    k_idx, k_emb, k_w, k_b = jax.random.split(key, 4)

    context_words = jax.random.randint(
        k_idx, (batch, context_size), 0, vocab_size, dtype=jnp.int32)
    # nn.Embedding weight: (vocab_size, embedding_dim)
    emb_table = jax.random.normal(k_emb, (vocab_size, embedding_dim),
                                  dtype=jnp.float32)
    # nn.Linear(embedding_dim, vocab_size): weight (V, D), bias (V,)
    lin_w = jax.random.normal(k_w, (vocab_size, embedding_dim),
                              dtype=jnp.float32) * 0.02
    lin_b = jax.random.normal(k_b, (vocab_size,), dtype=jnp.float32) * 0.02

    # tn=128 -> two vocab tiles, exercising the acc carry across the n axis.
    out = word2vec_cbow_forward(context_words, emb_table, lin_w.T, lin_b,
                                tn=128)
    out = jax.block_until_ready(out)

    # Pure-JAX reference (same semantics as the PyTorch forward).
    ref = jnp.take(emb_table, context_words, axis=0).sum(axis=1) @ lin_w.T + lin_b

    # Tolerance note: the kernel forms the context sums as a counts @ emb MXU
    # matmul; at TPU-default f32 matmul precision this can differ from the
    # exact f32 gather+sum reference by ~1e-3, while any structural error
    # (wrong row, missing bias, transposed weight) is O(0.1 - 1).
    np.testing.assert_allclose(np.asarray(out), np.asarray(ref),
                               rtol=2e-2, atol=2e-2)

    print("KERNEL_OK")
</pallas_src>

<mosaic_0001>
module attributes {stable_mosaic.version = 11 : i64} {
  func.func @cbow_kernel(%arg0: i32, %arg1: i32, %arg2: memref<8x4xi32, #tpu.memory_space<vmem>>, %arg3: memref<256x128xf32, #tpu.memory_space<vmem>>, %arg4: memref<128x128xf32, #tpu.memory_space<vmem>>, %arg5: memref<1x128xf32, #tpu.memory_space<vmem>>, %arg6: memref<8x128xf32, #tpu.memory_space<vmem>>, %arg7: memref<8x128xf32, #tpu.memory_space<vmem>>) attributes {dimension_semantics = [#tpu.dimension_semantics<parallel>, #tpu.dimension_semantics<arbitrary>], iteration_bounds = array<i64: 1, 2>, scalar_prefetch = 0 : i64, scratch_operands = 1 : i64, tpu.core_type = #tpu.core_type<tc>, window_params = [{transform_indices = @transform_0, window_bounds = array<i64: 8, 4>}, {pipeline_mode = #tpu.pipeline_mode<synchronous>, transform_indices = @transform_1, window_bounds = array<i64: 256, 128>}, {transform_indices = @transform_2, window_bounds = array<i64: 128, 128>}, {transform_indices = @transform_3, window_bounds = array<i64: 1, 128>}, {transform_indices = @transform_4, window_bounds = array<i64: 8, 128>}]} {
    %c0_i32 = arith.constant 0 : i32
    %0 = arith.cmpi eq, %arg1, %c0_i32 : i32
    %1 = arith.extui %0 : i1 to i32
    %c0_i32_0 = arith.constant 0 : i32
    %2 = arith.cmpi ne, %1, %c0_i32_0 : i32
    scf.if %2 {
      %c0_8 = arith.constant 0 : index
      %c0_9 = arith.constant 0 : index
      %10 = vector.load %arg2[%c0_8, %c0_9] : memref<8x4xi32, #tpu.memory_space<vmem>>, vector<8x4xi32>
      %11 = tpu.iota {dimensions = array<i32: 1>} : vector<8x256xi32>
      %cst_10 = arith.constant 0.000000e+00 : f32
      %12 = vector.broadcast %cst_10 : f32 to vector<8x256xf32>
      %13 = vector.extract_strided_slice %10 {offsets = [0, 0], sizes = [8, 1], strides = [1, 1]} : vector<8x4xi32> to vector<8x1xi32>
      %14 = vector.broadcast %13 : vector<8x1xi32> to vector<8x256xi32>
      %15 = arith.cmpi eq, %14, %11 : vector<8x256xi32>
      %16 = arith.extui %15 : vector<8x256xi1> to vector<8x256xi32>
      %17 = arith.sitofp %16 : vector<8x256xi32> to vector<8x256xf32>
      %18 = arith.addf %12, %17 : vector<8x256xf32>
      %19 = vector.extract_strided_slice %10 {offsets = [0, 1], sizes = [8, 1], strides = [1, 1]} : vector<8x4xi32> to vector<8x1xi32>
      %20 = vector.broadcast %19 : vector<8x1xi32> to vector<8x256xi32>
      %21 = arith.cmpi eq, %20, %11 : vector<8x256xi32>
      %22 = arith.extui %21 : vector<8x256xi1> to vector<8x256xi32>
      %23 = arith.sitofp %22 : vector<8x256xi32> to vector<8x256xf32>
      %24 = arith.addf %18, %23 : vector<8x256xf32>
      %25 = vector.extract_strided_slice %10 {offsets = [0, 2], sizes = [8, 1], strides = [1, 1]} : vector<8x4xi32> to vector<8x1xi32>
      %26 = vector.broadcast %25 : vector<8x1xi32> to vector<8x256xi32>
      %27 = arith.cmpi eq, %26, %11 : vector<8x256xi32>
      %28 = arith.extui %27 : vector<8x256xi1> to vector<8x256xi32>
      %29 = arith.sitofp %28 : vector<8x256xi32> to vector<8x256xf32>
      %30 = arith.addf %24, %29 : vector<8x256xf32>
      %31 = vector.extract_strided_slice %10 {offsets = [0, 3], sizes = [8, 1], strides = [1, 1]} : vector<8x4xi32> to vector<8x1xi32>
      %32 = vector.broadcast %31 : vector<8x1xi32> to vector<8x256xi32>
      %33 = arith.cmpi eq, %32, %11 : vector<8x256xi32>
      %34 = arith.extui %33 : vector<8x256xi1> to vector<8x256xi32>
      %35 = arith.sitofp %34 : vector<8x256xi32> to vector<8x256xf32>
      %36 = arith.addf %30, %35 : vector<8x256xf32>
      %c0_11 = arith.constant 0 : index
      %c0_12 = arith.constant 0 : index
      %37 = vector.load %arg3[%c0_11, %c0_12] : memref<256x128xf32, #tpu.memory_space<vmem>>, vector<256x128xf32>
      %cst_13 = arith.constant dense<0.000000e+00> : vector<8x128xf32>
      %38 = tpu.matmul %36, %37, %cst_13 {dimension_numbers = #tpu.dot_dimension_numbers<[1], [0], [0], [1], [0, 0, 1, 1], [], []>} : vector<8x256xf32>, vector<256x128xf32>, vector<8x128xf32> -> vector<8x128xf32>
      %c0_14 = arith.constant 0 : index
      %c0_15 = arith.constant 0 : index
      %39 = vector.load %arg7[%c0_14, %c0_15] : memref<8x128xf32, #tpu.memory_space<vmem>>, vector<8x128xf32>
      tpu.vector_store %arg7[%c0_14, %c0_15], %38 {strides = array<i32>} : memref<8x128xf32, #tpu.memory_space<vmem>>, vector<8x128xf32>,
    } else {
    }
    %c0 = arith.constant 0 : index
    %c0_1 = arith.constant 0 : index
    %3 = vector.load %arg7[%c0, %c0_1] : memref<8x128xf32, #tpu.memory_space<vmem>>, vector<8x128xf32>
    %c0_2 = arith.constant 0 : index
    %c0_3 = arith.constant 0 : index
    %4 = vector.load %arg4[%c0_2, %c0_3] : memref<128x128xf32, #tpu.memory_space<vmem>>, vector<128x128xf32>
    %cst = arith.constant dense<0.000000e+00> : vector<8x128xf32>
    %5 = tpu.matmul %3, %4, %cst {dimension_numbers = #tpu.dot_dimension_numbers<[1], [0], [0], [1], [0, 0, 1, 1], [], []>} : vector<8x128xf32>, vector<128x128xf32>, vector<8x128xf32> -> vector<8x128xf32>
    %c0_4 = arith.constant 0 : index
    %c0_5 = arith.constant 0 : index
    %6 = vector.load %arg5[%c0_4, %c0_5] : memref<1x128xf32, #tpu.memory_space<vmem>>, vector<1x128xf32>
    %7 = vector.broadcast %6 : vector<1x128xf32> to vector<8x128xf32>
    %8 = arith.addf %5, %7 : vector<8x128xf32>
    %c0_6 = arith.constant 0 : index
    %c0_7 = arith.constant 0 : index
    %9 = vector.load %arg6[%c0_6, %c0_7] : memref<8x128xf32, #tpu.memory_space<vmem>>, vector<8x128xf32>
    tpu.vector_store %arg6[%c0_6, %c0_7], %8 {strides = array<i32>} : memref<8x128xf32, #tpu.memory_space<vmem>>, vector<8x128xf32>,
    return
  }
  func.func @transform_0(%arg0: i32, %arg1: i32) -> (i32, i32) {
    %c0_i32 = arith.constant 0 : i32
    %c0_i32_0 = arith.constant 0 : i32
    return %arg0, %c0_i32 : i32, i32
  }
  func.func @transform_1(%arg0: i32, %arg1: i32) -> (i32, i32) {
    %c0_i32 = arith.constant 0 : i32
    %c0_i32_0 = arith.constant 0 : i32
    %c0_i32_1 = arith.constant 0 : i32
    return %c0_i32, %c0_i32_0 : i32, i32
  }
  func.func @transform_2(%arg0: i32, %arg1: i32) -> (i32, i32) {
    %c0_i32 = arith.constant 0 : i32
    %c0_i32_0 = arith.constant 0 : i32
    return %c0_i32, %arg1 : i32, i32
  }
  func.func @transform_3(%arg0: i32, %arg1: i32) -> (i32, i32) {
    %c0_i32 = arith.constant 0 : i32
    %c0_i32_0 = arith.constant 0 : i32
    return %c0_i32, %arg1 : i32, i32
  }
  func.func @transform_4(%arg0: i32, %arg1: i32) -> (i32, i32) {
    %c0_i32 = arith.constant 0 : i32
    return %arg0, %arg1 : i32, i32
  }
}

</mosaic_0001>

<bundles_post_ra>
// kernel: tpu_custom_call.1
= control target key start
LH: loop header
LB: loop body
LE: loop exit
PB: predicated region body
PF: predicated region fallthrough
CT: control target
= control target key end

     0   :  { %s1068_s0 = inlined_call_operand.vmem [shape: s32[8,4], index: 0, kind: input, shape index: {}]   ;;  %s1069_s1 = inlined_call_operand.hbm [shape: f32[256,128], index: 1, kind: input, shape index: {}]   ;;  %s1070_s2 = inlined_call_operand.hbm [shape: f32[128,256], index: 2, kind: input, shape index: {}]   ;;  %s1071_s3 = inlined_call_operand.vmem [shape: f32[1,256], index: 3, kind: input, shape index: {}]   ;;  %s1072_s4 = inlined_call_operand.hbm [shape: f32[8,256], index: 4, kind: output, shape index: {}]  }
   0x1   :  { %1076 = sst [smem:[#allocation13_spill]] %s1069_s1 }
   0x2   :  { %9 = vsyncpa [#allocation4], 0 }
   0x3   :  { %10 = vsyncpa [#allocation7], 0 }
   0x4   :  { %12 = vsyncpa [#allocation7 + $0x1], 0 }
   0x5   :  { %13 = vsyncpa [#allocation5], 0 }
   0x6   :  { %15 = vsyncpa [#allocation5 + $0x1], 0  ;;  %s874_s15 = smov 0   ;;  %s876_s16 = smov 0  }
   0x7   :  { %s878_s17 = smov 0   ;;  %s880_s18 = smov 0  }
   0x8   :  { %s882_s19 = smov 0   ;;  %s884_s20 = smov 0  }
   0x9 LB: > { %s580_s21 = sadd.s32 4294967295, %s838_s20   ;;  %s581_s22 = sadd.s32 4294967294, %s838_s20   ;;  %s838_s20 = sphi %s884_s20, %s21_s20   ;;  %s834_s19 = sphi %s882_s19, %s1093_s19   ;;  %s830_s18 = sphi %s880_s18, %s1092_s18   ;;  %s826_s17 = sphi %s878_s17, %s1091_s17   ;;  %s822_s16 = sphi %s876_s16, %s1090_s16   ;;  %s818_s15 = sphi %s874_s15, %s1089_s15  }
   0xa   : > { %p100_p0 = scmp.ne.s32.totalorder %s822_s16, %s818_s15  ;;  %p908_p1 = scmp.eq.s32.totalorder %s580_s21, 0 }
   0xb   : > { %p912_p2 = scmp.eq.s32.totalorder %s580_s21, 1  ;;  %p158_p3 = scmp.eq.s32.totalorder %s581_s22, 1 }
   0xc   : > { %p918_p4 = por %p908_p1, %p100_p0  ;;  %p582_p5 = scmp.ge.s32.totalorder %s838_s20, 1 }
   0xd   : > { %p923_p6 = por %p158_p3, %p100_p0  ;;  %p165_p7 = scmp.lt.s32.totalorder %s838_s20, 3 }
   0xe   : > { %s1081_s1 = sld [smem:[#allocation13_spill]]  ;;  %s840_s5 = smov [#allocation3]  }
   0xf   : > { %p931_p8 = pnand %p582_p5, %p165_p7  ;;  %s185_s6 = sshll.u32 %s840_s5, 4  ;;  %s186_s6 = int_to_ptr.vmem [resolvable:$true] %s185_s6 }
  0x10   : > { %p585_p11 = scmp.ge.s32.totalorder %s838_s20, 2  ;;  %s1073_s7 = smov 128  }
  0x11   : > { %p613_p9 = pneg %p931_p8  ;;  %s1074_s8 = smov 8  }
  0x12   : > { %s30_s9 = sadd.s32 1, %s834_s19  ;;  %s87_s10 = sadd.s32 1, %s826_s17 }
  0x13   : > { %p614_p10 = pnand %p613_p9, %p908_p1  ;;  %p31_p12 = scmp.ge.s32.totalorder %s30_s9, 2 }
  0x14   : > { %s183_s29 = sshll.u32 %s1081_s1, 4  ;;  %p94_p13 = scmp.ne.s32.totalorder %s826_s17, %s822_s16  ;;  %s184_s29 = int_to_ptr.hbm [resolvable:$true] %s183_s29 }
  0x15   : > { %616 = dma.hbm_to_vmem [thread:$0]  (!%p614_p10), %s184_s29, 4096, %s186_s6, [#allocation4], %s1073_s7, %s1073_s7, %s1074_s8  }
  0x16   : > { %p95_p0 = scmp.eq.s32.totalorder %s838_s20, 0  ;;  %s1095_s9 = smov (%p31_p12, %s30_s9), 0 }
  0x17   : > { %1083 = sst [smem:[#allocation12_spill]] %s1095_s9  ;;  %p956_p5 = por %p912_p2, %p94_p13 }
  0x18   : > { %p950_p3 = por %p95_p0, %p94_p13  ;;  %s84_s13 = ssub.s32 %s834_s19, %s1095_s9 }
  0x19   : > { %p626_p7 = scmp.lt.s32.totalorder %s838_s20, 2  ;;  %p85_p9 = scmp.eq.s32.totalorder %s84_s13, 0 }
  0x1a   : > { %s199_s14 = sand.u32 1, %s826_s17   ;;  %s587_s27 = sshll.u32 %s834_s19, 3 }
  0x1b   : > { %s586_s21 = sshll.u32 %s199_s14, 7  ;;  %s207_s5 = scalar_lea.hbm %s1070_s2, %s587_s27 }
  0x1c   : > { %s965_s22 = scalar_select %p85_p9, %s826_s17, %s87_s10  }
  0x1d   : > { %s203_s6 = scalar_lea.vmem [#allocation6], %s586_s21  ;;  %s208_s24 = sshll.u32 %s207_s5, 4  ;;  %s209_s24 = int_to_ptr.hbm [resolvable:$true] %s208_s24 }
  0x1e   : > { %s210_s7 = sshll.u32 %s203_s6, 4  ;;  %p618_p2 = pnand %p626_p7, %p950_p3  ;;  %s211_s7 = int_to_ptr.vmem [resolvable:$true] %s210_s7 }
  0x1f   : > { %s200_s8 = scalar_lea.sflag [#allocation7], %s199_s14  ;;  %s843_s1 = smov 256  }
  0x20   : > { %s1086_s9 = smov 8   ;;  %s1087_s13 = smov 128  }
  0x21   : > { %620 = dma.hbm_to_vmem [thread:$0]  (!%p618_p2), %s209_s24, 2048, %s211_s7, %s200_s8, %s843_s1, %s1087_s13, %s1086_s9  }
  0x22   : > { %228 = sbr.rel (%p931_p8) target bundleno = 478 (0x1de), region = 36 }
  0x27   : > { %805 = dma.done.wait (%p908_p1), [#allocation4], 4096  }
  0x28   : > { %807 = vsyncadd (%p908_p1), [#allocation4], 4294963200  ;;  %s982_s10 = sand.u32 1, %s822_s16  }
  0x29   : > { %s590_s11 = sshll.u32 %s982_s10, 7  ;;  %s236_s14 = scalar_lea.sflag [#allocation7], %s982_s10 }
  0x2a   : > { %s986_s21 = scalar_lea.vmem [#allocation6], %s590_s11 }
  0x2b   : > { %809 = dma.done.wait (%p918_p4), %s236_s14, 2048  }
  0x2c   : > { %811 = vsyncadd (%p918_p4), %s236_s14, 4294965248  ;;  %s591_s1 = sshll.u32 %s982_s10, 3  ;;  %p276_p1 = scmp.lt.s32.totalorder %s830_s18, 1 }
  0x2d   : > { %s1001_s9 = scalar_lea.vmem [#allocation8], %s591_s1  ;;  %p592_p8 = scmp.ne.s32.totalorder %s830_s18, 0 }
  0x2e   : > { %s995_s23 = scalar_select %p276_p1, %s830_s18, 1 }
  0x2f   : > { %282 = sbr.rel (%p592_p8) target bundleno = 315 (0x13b), region = 48 }
  0x30   : > { %s278_s8 = scalar_lea.vmem %s1071_s3, %s995_s23 }
  0x34   : > { %v283_v0 = vld [vmem:[%s1068_s0] sm:$0xff]  ;;  %v844_v2 = vmov 0   ;;  %v845_v3 = vmov 2   ;;  %v345_v5 = vld [vmem:[#allocation3 + $0x70] sm:$0xff]  ;;  %v344_v7 = vld [vmem:[#allocation3 + $0x68] sm:$0xff]  ;;  %v846_v13 = vmov 1   ;;  %v284_v37 = vlaneseq }
  0x35   : > { %v346_v1 = vld [vmem:[#allocation3 + $0x78] sm:$0xff]  ;;  %686 = vset.pattern.permute.xlu0 %v844_v2  ;;  %688 = vset.pattern.permute.xlu1 %v845_v3  ;;  %v361_v6 = vld [vmem:[#allocation3 + $0xf0] sm:$0xff]  ;;  %v360_v8 = vld [vmem:[#allocation3 + $0xe8] sm:$0xff]  ;;  %v847_v14 = vmov 3   ;;  %v848_v44 = vmov 0.0  }
  0x36   : > { %v362_v4 = vld [vmem:[#allocation3 + $0xf8] sm:$0xff]  ;;  %288 = vperm.xlu0 %686, %v283_v0   ;;  %310 = vperm.xlu1 %688, %v283_v0   ;;  %v343_v9 = vld [vmem:[#allocation3 + $0x60] sm:$0xff]  ;;  %v341_v15 = vld [vmem:[#allocation3 + $0x50] sm:$0xff]  ;;  %v285_v38 = vand.u32 127, %v284_v37 }
  0x37   : > { %363 = vmatpush.msra.mxu0 %v346_v1  ;;  %383 = vmatpush.msra.mxu1 %v362_v4  ;;  %v359_v10 = vld [vmem:[#allocation3 + $0xe0] sm:$0xff]  ;;  %v342_v11 = vld [vmem:[#allocation3 + $0x58] sm:$0xff]  ;;  %v357_v16 = vld [vmem:[#allocation3 + $0xd0] sm:$0xff] }
  0x38   : > { %v358_v12 = vld [vmem:[#allocation3 + $0xd8] sm:$0xff]  ;;  %v340_v17 = vld [vmem:[#allocation3 + $0x48] sm:$0xff]  ;;  %v339_v19 = vld [vmem:[#allocation3 + $0x40] sm:$0xff]  ;;  %v286_v41 = vadd.s32 128, %v285_v38 }
  0x39   : > { %364 = vmatpush.msra.mxu0 %v345_v5  ;;  %384 = vmatpush.msra.mxu1 %v361_v6  ;;  %v356_v18 = vld [vmem:[#allocation3 + $0xc8] sm:$0xff]  ;;  %v355_v20 = vld [vmem:[#allocation3 + $0xc0] sm:$0xff]  ;;  %v338_v21 = vld [vmem:[#allocation3 + $0x38] sm:$0xff] }
  0x3a   : > { %v354_v22 = vld [vmem:[#allocation3 + $0xb8] sm:$0xff]  ;;  %v337_v23 = vld [vmem:[#allocation3 + $0x30] sm:$0xff]  ;;  %v336_v25 = vld [vmem:[#allocation3 + $0x28] sm:$0xff] }
  0x3b   : > { %365 = vmatpush.msra.mxu0 %v344_v7  ;;  %385 = vmatpush.msra.mxu1 %v360_v8  ;;  %v353_v24 = vld [vmem:[#allocation3 + $0xb0] sm:$0xff]  ;;  %v352_v26 = vld [vmem:[#allocation3 + $0xa8] sm:$0xff]  ;;  %v335_v27 = vld [vmem:[#allocation3 + $0x20] sm:$0xff] }
  0x3c   : > { %v351_v28 = vld [vmem:[#allocation3 + $0xa0] sm:$0xff]  ;;  %v334_v29 = vld [vmem:[#allocation3 + $0x18] sm:$0xff]  ;;  %v333_v31 = vld [vmem:[#allocation3 + $0x10] sm:$0xff] }
  0x3d   : > { %366 = vmatpush.msra.mxu0 %v343_v9  ;;  %386 = vmatpush.msra.mxu1 %v359_v10  ;;  %v350_v30 = vld [vmem:[#allocation3 + $0x98] sm:$0xff]  ;;  %v349_v32 = vld [vmem:[#allocation3 + $0x90] sm:$0xff]  ;;  %v332_v33 = vld [vmem:[#allocation3 + $0x8] sm:$0xff] }
  0x3e   : > { %687 = vset.pattern.permute.xlu0 %v846_v13  ;;  %689 = vset.pattern.permute.xlu1 %v847_v14  ;;  %v348_v34 = vld [vmem:[#allocation3 + $0x88] sm:$0xff]  ;;  %v331_v35 = vld [vmem:[#allocation3] sm:$0xff] }
  0x3f   : > { %299 = vperm.xlu0 %687, %v283_v0   ;;  %321 = vperm.xlu1 %689, %v283_v0   ;;  %v347_v36 = vld [vmem:[#allocation3 + $0x80] sm:$0xff] }
  0x40   : > { %367 = vmatpush.msra.mxu0 %v342_v11  ;;  %387 = vmatpush.msra.mxu1 %v358_v12 }
  0x42   : > { %368 = vmatpush.msra.mxu0 %v341_v15  ;;  %388 = vmatpush.msra.mxu1 %v357_v16 }
  0x44   : > { %369 = vmatpush.msra.mxu0 %v340_v17  ;;  %389 = vmatpush.msra.mxu1 %v356_v18 }
  0x46   : > { %370 = vmatpush.msra.mxu0 %v339_v19  ;;  %390 = vmatpush.msra.mxu1 %v355_v20 }
  0x47   : > { %690 = vset.pattern.permute.xlu0 %v847_v14 }
  0x48   : > { %371 = vmatpush.msra.mxu0 %v338_v21  ;;  %391 = vmatpush.msra.mxu1 %v354_v22 }
  0x4a   : > { %372 = vmatpush.msra.mxu0 %v337_v23  ;;  %392 = vmatpush.msra.mxu1 %v353_v24 }
  0x4c   : > { %373 = vmatpush.msra.mxu0 %v336_v25  ;;  %393 = vmatpush.msra.mxu1 %v352_v26 }
  0x4e   : > { %374 = vmatpush.msra.mxu0 %v335_v27  ;;  %394 = vmatpush.msra.mxu1 %v351_v28 }
  0x50   : > { %375 = vmatpush.msra.mxu0 %v334_v29  ;;  %395 = vmatpush.msra.mxu1 %v350_v30 }
  0x52   : > { %376 = vmatpush.msra.mxu0 %v333_v31  ;;  %396 = vmatpush.msra.mxu1 %v349_v32 }
  0x54   : > { %377 = vmatpush.msra.mxu0 %v332_v33  ;;  %397 = vmatpush.msra.mxu1 %v348_v34 }
  0x56   : > { %378 = vmatpush.msra.mxu0 %v331_v35  ;;  %398 = vmatpush.msra.mxu1 %v347_v36 }
  0xa8   : > { %v289_v39 = vpop.permute.xlu0 %288  ;;  %v311_v40 = vpop.permute.xlu1 %310 }
  0xa9   : > { %vm290_vm0 = vcmp.eq.s32.totalorder %v289_v39, %v285_v38  ;;  %vm291_vm1 = vcmp.eq.s32.totalorder %v289_v39, %v286_v41  ;;  %vm312_vm2 = vcmp.eq.s32.totalorder %v311_v40, %v285_v38  ;;  %vm313_vm3 = vcmp.eq.s32.totalorder %v311_v40, %v286_v41 }
  0xaa   : > { %v593_v45 = vsel %vm290_vm0, 1.0, %v848_v44  ;;  %v594_v46 = vsel %vm291_vm1, 1.0, %v848_v44  ;;  %v597_v51 = vsel %vm312_vm2, 1.0, %v848_v44  ;;  %v598_v52 = vsel %vm313_vm3, 1.0, %v848_v44 }
  0xb1   : > { %v300_v42 = vpop.permute.xlu0 %299  ;;  %v322_v43 = vpop.permute.xlu1 %321 }
  0xb2   : > { %vm301_vm4 = vcmp.eq.s32.totalorder %v300_v42, %v285_v38  ;;  %vm302_vm5 = vcmp.eq.s32.totalorder %v300_v42, %v286_v41  ;;  %vm323_vm6 = vcmp.eq.s32.totalorder %v322_v43, %v285_v38  ;;  %vm324_vm7 = vcmp.eq.s32.totalorder %v322_v43, %v286_v41 }
  0xb3   : > { %v595_v47 = vsel %vm301_vm4, 1.0, %v848_v44  ;;  %v596_v48 = vsel %vm302_vm5, 1.0, %v848_v44  ;;  %v599_v53 = vsel %vm323_vm6, 1.0, %v848_v44  ;;  %v600_v54 = vsel %vm324_vm7, 1.0, %v848_v44 }
  0xb4   : > { %v307_v49 = vadd.f32 %v595_v47, %v593_v45  ;;  %v308_v50 = vadd.f32 %v596_v48, %v594_v46 }
  0xb6   : > { %v318_v55 = vadd.f32 %v597_v51, %v307_v49  ;;  %v319_v56 = vadd.f32 %v598_v52, %v308_v50 }
  0xb8   : > { %v329_v57 = vadd.f32 %v599_v53, %v318_v55  ;;  %v330_v58 = vadd.f32 %v600_v54, %v319_v56 }
  0xba   : > { %379 = vmatmul.f32.vlgmr.msra.gmra.mxu0 %v329_v57  ;;  %399 = vmatmul.f32.vlgmr.msra.gmra.mxu1 %v330_v58 }
 0x137   : > { %v380_v59 = vpop.f32.mrf.mxu0  ;;  %v400_v60 = vpop.f32.mrf.mxu1 }
 0x138   : > { %v401_v61 = vadd.f32 %v400_v60, %v380_v59 }
 0x13a   : > { %403 = vst [vmem:[#allocation2] sm:$0xff] %v401_v61 }
 0x13b PF: > { %v420_v62 = vld [vmem:[%s986_s21 + $0x78] sm:$0xff]  ;;  %v419_v63 = vld [vmem:[%s986_s21 + $0x70] sm:$0xff]  ;;  %v418_v0 = vld [vmem:[%s986_s21 + $0x68] sm:$0xff]  ;;  %s602_s28 = sshll.u32 %s830_s18, 3  ;;  %s461_s11 = sshll.u32 %s1001_s9, 4  ;;  %s462_s11 = int_to_ptr.vmem [resolvable:$true] %s461_s11 }
 0x13c   : > { %425 = vmatpush.msra.mxu0 %v420_v62  ;;  %v417_v1 = vld [vmem:[%s986_s21 + $0x60] sm:$0xff]  ;;  %v416_v2 = vld [vmem:[%s986_s21 + $0x58] sm:$0xff]  ;;  %v415_v3 = vld [vmem:[%s986_s21 + $0x50] sm:$0xff]  ;;  %s459_s6 = scalar_lea.hbm %s1072_s4, %s602_s28  ;;  %s772_s23 = scalar_lea.hbm %s1072_s4, 16 }
 0x13d   : > { %v414_v4 = vld [vmem:[%s986_s21 + $0x48] sm:$0xff]  ;;  %v413_v5 = vld [vmem:[%s986_s21 + $0x40] sm:$0xff]  ;;  %v412_v6 = vld [vmem:[%s986_s21 + $0x38] sm:$0xff]  ;;  %s463_s14 = sshll.u32 %s459_s6, 4  ;;  %s464_s14 = int_to_ptr.hbm [resolvable:$true] %s463_s14 }
 0x13e   : > { %426 = vmatpush.msra.mxu0 %v419_v63  ;;  %v411_v7 = vld [vmem:[%s986_s21 + $0x30] sm:$0xff]  ;;  %v410_v8 = vld [vmem:[%s986_s21 + $0x28] sm:$0xff]  ;;  %v409_v9 = vld [vmem:[%s986_s21 + $0x20] sm:$0xff]  ;;  %s766_s1 = sshra.s32 %s464_s14, 4  ;;  %s767_s1 = int_to_ptr.hbm [resolvable:$true] %s766_s1 }
 0x13f   : > { %v408_v10 = vld [vmem:[%s986_s21 + $0x18] sm:$0xff]  ;;  %v407_v11 = vld [vmem:[%s986_s21 + $0x10] sm:$0xff]  ;;  %v406_v12 = vld [vmem:[%s986_s21 + $0x8] sm:$0xff]  ;;  %s768_s18 = scalar_lea.hbm %s767_s1, 8  ;;  %p773_p13 = scmp.lt.s32.totalorder %s767_s1, %s1072_s4 }
 0x140   : > { %427 = vmatpush.msra.mxu0 %v418_v0  ;;  %v405_v13 = vld [vmem:[%s986_s21] sm:$0xff]  ;;  %v691_v15 = vld [vmem:[%s278_s8] ss:$0 sm:$0xff]  ;;  %s447_s21 = scalar_lea.sflag [#allocation5], %s982_s10  ;;  %p769_p4 = scmp.ne.s32.totalorder %s767_s1, %s768_s18 }
 0x141   : > { %v404_v14 = vld [vmem:[#allocation2] sm:$0xff]  ;;  %p774_p0 = scmp.lt.s32.totalorder %s772_s23, %s768_s18 }
 0x142   : > { %428 = vmatpush.msra.mxu0 %v417_v1  ;;  %p770_p10 = pnand %p769_p4, %p956_p5 }
 0x143   : > { %p775_p3 = por %p774_p0, %p773_p13 }
 0x144   : > { %429 = vmatpush.msra.mxu0 %v416_v2  ;;  %p771_p12 = pneg %p770_p10 }
 0x146   : > { %430 = vmatpush.msra.mxu0 %v415_v3  ;;  %p776_p7 = pnand %p775_p3, %p771_p12 }
 0x148   : > { %431 = vmatpush.msra.mxu0 %v414_v4 }
 0x14a   : > { %432 = vmatpush.msra.mxu0 %v413_v5 }
 0x14c   : > { %433 = vmatpush.msra.mxu0 %v412_v6 }
 0x14e   : > { %434 = vmatpush.msra.mxu0 %v411_v7 }
 0x150   : > { %435 = vmatpush.msra.mxu0 %v410_v8 }
 0x152   : > { %436 = vmatpush.msra.mxu0 %v409_v9 }
 0x154   : > { %437 = vmatpush.msra.mxu0 %v408_v10 }
 0x156   : > { %438 = vmatpush.msra.mxu0 %v407_v11 }
 0x158   : > { %439 = vmatpush.msra.mxu0 %v406_v12 }
 0x15a   : > { %440 = vmatpush.msra.mxu0 %v405_v13 }
 0x15b   : > { %441 = vmatmul.f32.vlgmr.msra.gmra.mxu0 %v404_v14 }
 0x1d8   : > { %v442_v16 = vpop.f32.mrf.mxu0 }
 0x1d9   : > { %v443_v17 = vadd.f32 %v691_v15, %v442_v16 }
 0x1db   : > { %445 = vst [vmem:[%s1001_s9] sm:$0xff] %v443_v17 }
 0x1dc   : > { %779 = shalt.err (!%p776_p7)
}
 0x1dd   : > { %611 = dma.vmem_to_hbm [thread:$0]  (%p956_p5), %s462_s11, 128, %s464_s14, %s447_s21  }
 0x1de PF: > { %s475_s10 = sand.u32 1, %s818_s15   ;;  %p622_p9 = pnand %p585_p11, %p923_p6 }
 0x1df   : > { %s476_s9 = scalar_lea.sflag [#allocation5], %s475_s10 }
 0x1e0   : > { %p623_p2 = pneg %p622_p9 }
 0x1e2   : > { %813 = dma.done.wait (%p623_p2), %s476_s9, 128  }
 0x1e3   : > { %815 = vsyncadd (%p623_p2), %s476_s9, 4294967168  ;;  %s21_s20 = sadd.s32 1, %s838_s20   ;;  %s1088_s12 = sld [smem:[#allocation12_spill]] }
 0x1e4   : > { %p18_p1 = scmp.ge.s32.totalorder %s21_s20, 4   ;;  %s1089_s15 = smov %s822_s16 }
 0x1e5   : > { %s1090_s16 = smov %s826_s17  ;;  %s1091_s17 = smov %s965_s22 }
 0x1e6   : > { %s1092_s18 = smov %s834_s19  ;;  %20 = sbr.rel (!%p18_p1) target bundleno = 9 (0x9), region = 96 }
 0x1e9   : > { %s1093_s19 = smov %s1088_s12 }
 0x1eb   :  { %482 = vsyncpa [#allocation4], 1 }
 0x1ec   :  { %484 = vsyncpa [#allocation4 + $0x1], 1 }
 0x1ed   :  { %485 = vsyncpa [#allocation7], 1 }
 0x1ee   :  { %487 = vsyncpa [#allocation7 + $0x1], 1 }
 0x1ef   :  { %488 = vsyncpa [#allocation5], 1 }
 0x1f0   :  { %490 = vsyncpa [#allocation5 + $0x1], 1 }

</bundles_post_ra>
